<compile_context>
chip_gen: v5e
topology: v5e:2x2
jax: 0.10.0
libtpu: 0.0.40
codegen_flags: <defaults>
</compile_context>

<pallas_src>
import functools
import math

import jax
import jax.numpy as jnp
from jax.experimental import pallas as pl
from jax.experimental.pallas import tpu as pltpu

LANE = 128
_NEG_INF = -1e30


def _round_up(x, m):
    return ((x + m - 1) // m) * m


# ---------------------------------------------------------------------------
# Kernel 1: per-node projections (row-tiled)
#   pn = x @ W_neigh          -> bf16   (feeds the big A @ pn reduction)
#   ps = x @ W_self + bias    -> f32    (added once in the epilogue)
# ---------------------------------------------------------------------------
def _proj_kernel(x_ref, wn_ref, ws_ref, b_ref, pn_ref, ps_ref):
    x = x_ref[...]
    pn_ref[...] = jnp.dot(x, wn_ref[...],
                          preferred_element_type=jnp.float32).astype(pn_ref.dtype)
    ps_ref[...] = (jnp.dot(x, ws_ref[...], preferred_element_type=jnp.float32)
                   + b_ref[...]).astype(ps_ref.dtype)


# ---------------------------------------------------------------------------
# Kernel 2: aggregation + epilogue
#   acc[i]  += A[i, k] @ pn[k]                      (K reduction, f32 accumulator)
#   last k:  h = acc + ps[i] ; relu / masked log_softmax ; lane-dense store
# ---------------------------------------------------------------------------
def _agg_kernel(a_ref, pn_ref, ps_ref, o_ref, acc_ref,
                *, n_valid_cols, apply_relu, apply_log_softmax):
    k = pl.program_id(1)

    @pl.when(k == 0)
    def _():
        acc_ref[...] = jnp.zeros_like(acc_ref)

    acc_ref[...] += jnp.dot(a_ref[...], pn_ref[...],
                            preferred_element_type=jnp.float32)

    @pl.when(k == pl.num_programs(1) - 1)
    def _():
        h = acc_ref[...] + ps_ref[...]
        if apply_relu:
            h = jnp.maximum(h, 0.0)
        if apply_log_softmax:
            # Mask lane-padded class columns before the softmax reduction.
            col = jax.lax.broadcasted_iota(jnp.int32, h.shape, dimension=1)
            h = jnp.where(col < n_valid_cols, h, _NEG_INF)
            m = jnp.max(h, axis=-1, keepdims=True)
            s = h - m
            lse = jnp.log(jnp.sum(jnp.exp(s), axis=-1, keepdims=True))
            h = s - lse
        o_ref[...] = h.astype(o_ref.dtype)


def sage_layer(a_bf16, x_bf16, w_self, w_neigh, bias,
               *, n_valid_cols, apply_relu, apply_log_softmax, out_dtype,
               tm=256, tk=256, vmem_limit_bytes=32 * 1024 * 1024):
    """One fused SAGEConv('mean') layer: projection kernel + tiled aggregation kernel."""
    n_pad = a_bf16.shape[0]
    f_in = x_bf16.shape[1]
    f_out = w_self.shape[1]
    assert n_pad % tm == 0 and n_pad % tk == 0, (n_pad, tm, tk)

    # ---- 1) per-node projections: pn = x @ W_neigh (bf16), ps = x @ W_self + b (f32) ----
    pn, ps = pl.pallas_call(
        _proj_kernel,
        out_shape=(jax.ShapeDtypeStruct((n_pad, f_out), jnp.bfloat16),
                   jax.ShapeDtypeStruct((n_pad, f_out), jnp.float32)),
        grid_spec=pltpu.PrefetchScalarGridSpec(
            num_scalar_prefetch=0,
            grid=(n_pad // tm,),
            in_specs=[
                pl.BlockSpec((tm, f_in), lambda i: (i, 0)),
                pl.BlockSpec((f_in, f_out), lambda i: (0, 0)),   # W_neigh (resident)
                pl.BlockSpec((f_in, f_out), lambda i: (0, 0)),   # W_self  (resident)
                pl.BlockSpec((1, f_out), lambda i: (0, 0)),      # bias    (resident)
            ],
            out_specs=[
                pl.BlockSpec((tm, f_out), lambda i: (i, 0)),
                pl.BlockSpec((tm, f_out), lambda i: (i, 0)),
            ],
        ),
        compiler_params=pltpu.CompilerParams(
            dimension_semantics=("parallel",),
            vmem_limit_bytes=vmem_limit_bytes),
    )(x_bf16, w_neigh, w_self, bias)

    # ---- 2) tiled aggregation (A_norm @ pn) + epilogue ----
    kernel = functools.partial(
        _agg_kernel, n_valid_cols=n_valid_cols,
        apply_relu=apply_relu, apply_log_softmax=apply_log_softmax)
    return pl.pallas_call(
        kernel,
        out_shape=jax.ShapeDtypeStruct((n_pad, f_out), out_dtype),
        grid_spec=pltpu.PrefetchScalarGridSpec(
            num_scalar_prefetch=0,
            grid=(n_pad // tm, n_pad // tk),
            in_specs=[
                pl.BlockSpec((tm, tk), lambda i, k: (i, k)),      # A_norm tile
                pl.BlockSpec((tk, f_out), lambda i, k: (k, 0)),   # pn tile (reduction)
                pl.BlockSpec((tm, f_out), lambda i, k: (i, 0)),   # ps tile (resident over k)
            ],
            out_specs=pl.BlockSpec((tm, f_out), lambda i, k: (i, 0)),
            scratch_shapes=[pltpu.VMEM((tm, f_out), jnp.float32)],
        ),
        compiler_params=pltpu.CompilerParams(
            dimension_semantics=("parallel", "arbitrary"),
            vmem_limit_bytes=vmem_limit_bytes),
    )(a_bf16, pn, ps)


# ---------------------------------------------------------------------------
# SAGE model (parameters + forward_full), mirroring the PyTorch module in eval mode
# ---------------------------------------------------------------------------
class SAGEPallas:
    def __init__(self, in_feats, n_hidden, n_classes, n_layers, key, *, tm=256, tk=256):
        self.in_feats = in_feats
        self.n_classes = n_classes
        self.n_layers = n_layers
        self.tm = tm
        self.tk = tk
        self.dims = [in_feats] + [n_hidden] * (n_layers - 1) + [n_classes]

        # Unpadded f32 parameters (parity with SAGEConv.reset_parameters / reference).
        self.params = []
        for l in range(n_layers):
            f_in, f_out = self.dims[l], self.dims[l + 1]
            key, k1, k2 = jax.random.split(key, 3)
            scale = (2.0 / (f_in + f_out)) ** 0.5
            w_self = scale * jax.random.normal(k1, (f_in, f_out), jnp.float32)
            w_neigh = scale * jax.random.normal(k2, (f_in, f_out), jnp.float32)
            bias = jnp.zeros((1, f_out), jnp.float32)
            self.params.append((w_self, w_neigh, bias))

        # Lane-padded bf16 weights (built once, not per forward call).
        self.padded_params = []
        for (w_self, w_neigh, bias) in self.params:
            f_in, f_out = w_self.shape
            f_in_p, f_out_p = _round_up(f_in, LANE), _round_up(f_out, LANE)

            def pad_w(w):
                return jnp.pad(w, ((0, f_in_p - f_in), (0, f_out_p - f_out)))

            self.padded_params.append((
                pad_w(w_self).astype(jnp.bfloat16),
                pad_w(w_neigh).astype(jnp.bfloat16),
                jnp.pad(bias, ((0, 0), (0, f_out_p - f_out))),   # bias stays f32
            ))

    def forward_full(self, a_norm, x):
        # TODO(synk): training-time edge-cut reweighting (block.edata['cut'] branch) and
        # dropout are not implemented; this matches the eval-mode forward path.
        n = x.shape[0]
        n_pad = _round_up(n, math.lcm(self.tm, self.tk))
        f_in_p = _round_up(self.dims[0], LANE)

        # Zero padding keeps the math exact: padded source columns of A are zero.
        a_pad = jnp.pad(a_norm, ((0, n_pad - n), (0, n_pad - n))).astype(jnp.bfloat16)
        h = jnp.pad(x, ((0, n_pad - n), (0, f_in_p - self.dims[0]))).astype(jnp.bfloat16)

        for l, (w_self, w_neigh, bias) in enumerate(self.padded_params):
            last = (l == self.n_layers - 1)
            h = sage_layer(
                a_pad, h, w_self, w_neigh, bias,
                n_valid_cols=self.dims[l + 1],
                apply_relu=not last,
                apply_log_softmax=last,
                out_dtype=jnp.float32 if last else jnp.bfloat16,
                tm=self.tm, tk=self.tk)
        return h[:n, :self.n_classes]


# ---------------------------------------------------------------------------
# Pure-JAX reference (same bf16-input / f32-accumulation numerics) for sanity check
# ---------------------------------------------------------------------------
def sage_reference(a_norm, x, params):
    a = a_norm.astype(jnp.bfloat16)
    h = x.astype(jnp.bfloat16)
    n_layers = len(params)
    out = None
    for l, (w_self, w_neigh, bias) in enumerate(params):
        pn = jnp.dot(h, w_neigh.astype(jnp.bfloat16),
                     preferred_element_type=jnp.float32).astype(jnp.bfloat16)
        hf = (jnp.dot(a, pn, preferred_element_type=jnp.float32)
              + jnp.dot(h, w_self.astype(jnp.bfloat16),
                        preferred_element_type=jnp.float32)
              + bias)
        if l != n_layers - 1:
            h = jnp.maximum(hf, 0.0).astype(jnp.bfloat16)
        else:
            out = jax.nn.log_softmax(hf, axis=-1)
    return out


if __name__ == "__main__":
    key = jax.random.PRNGKey(0)
    key, k_adj, k_x, k_params = jax.random.split(key, 4)

    # Small synthetic graph; sizes are deliberately NOT multiples of 128/256 so the
    # node / feature / class padding paths are exercised.
    N, in_feats, n_hidden, n_classes, n_layers = 600, 100, 128, 10, 3

    # Random directed graph; build row-normalized (mean) adjacency, dst x src.
    adj = (jax.random.uniform(k_adj, (N, N)) < 0.05).astype(jnp.float32)
    deg = jnp.sum(adj, axis=1, keepdims=True)
    a_norm = adj / jnp.maximum(deg, 1.0)      # zero-in-degree rows stay zero (DGL 'mean')

    x = jax.random.normal(k_x, (N, in_feats), jnp.float32)

    model = SAGEPallas(in_feats, n_hidden, n_classes, n_layers, k_params, tm=256, tk=256)

    out = jax.block_until_ready(model.forward_full(a_norm, x))

    ref = sage_reference(a_norm, x, model.params)
    assert out.shape == (N, n_classes), out.shape
    assert bool(jnp.all(jnp.isfinite(out))), "non-finite output"
    err = float(jnp.max(jnp.abs(out - ref)))
    assert err < 2e-2, f"mismatch vs reference: max abs err {err}"

    print("KERNEL_OK")
</pallas_src>

<mosaic_0001>
module attributes {stable_mosaic.version = 11 : i64} {
  func.func @_proj_kernel(%arg0: i32, %arg1: memref<256x128xbf16, #tpu.memory_space<vmem>>, %arg2: memref<128x128xbf16, #tpu.memory_space<vmem>>, %arg3: memref<128x128xbf16, #tpu.memory_space<vmem>>, %arg4: memref<1x128xf32, #tpu.memory_space<vmem>>, %arg5: memref<256x128xbf16, #tpu.memory_space<vmem>>, %arg6: memref<256x128xf32, #tpu.memory_space<vmem>>) attributes {dimension_semantics = [#tpu.dimension_semantics<parallel>], iteration_bounds = array<i64: 3>, scalar_prefetch = 0 : i64, scratch_operands = 0 : i64, tpu.core_type = #tpu.core_type<tc>, window_params = [{transform_indices = @transform_0, window_bounds = array<i64: 256, 128>}, {pipeline_mode = #tpu.pipeline_mode<synchronous>, transform_indices = @transform_1, window_bounds = array<i64: 128, 128>}, {pipeline_mode = #tpu.pipeline_mode<synchronous>, transform_indices = @transform_2, window_bounds = array<i64: 128, 128>}, {pipeline_mode = #tpu.pipeline_mode<synchronous>, transform_indices = @transform_3, window_bounds = array<i64: 1, 128>}, {transform_indices = @transform_4, window_bounds = array<i64: 256, 128>}, {transform_indices = @transform_5, window_bounds = array<i64: 256, 128>}]} {
    %c0 = arith.constant 0 : index
    %c0_0 = arith.constant 0 : index
    %0 = vector.load %arg1[%c0, %c0_0] : memref<256x128xbf16, #tpu.memory_space<vmem>>, vector<256x128xbf16>
    %c0_1 = arith.constant 0 : index
    %c0_2 = arith.constant 0 : index
    %1 = vector.load %arg2[%c0_1, %c0_2] : memref<128x128xbf16, #tpu.memory_space<vmem>>, vector<128x128xbf16>
    %cst = arith.constant dense<0.000000e+00> : vector<256x128xf32>
    %2 = tpu.matmul %0, %1, %cst {dimension_numbers = #tpu.dot_dimension_numbers<[1], [0], [0], [1], [0, 0, 1, 1], [], []>} : vector<256x128xbf16>, vector<128x128xbf16>, vector<256x128xf32> -> vector<256x128xf32>
    %3 = arith.truncf %2 : vector<256x128xf32> to vector<256x128xbf16>
    %c0_3 = arith.constant 0 : index
    %c0_4 = arith.constant 0 : index
    %4 = vector.load %arg5[%c0_3, %c0_4] : memref<256x128xbf16, #tpu.memory_space<vmem>>, vector<256x128xbf16>
    tpu.vector_store %arg5[%c0_3, %c0_4], %3 {strides = array<i32>} : memref<256x128xbf16, #tpu.memory_space<vmem>>, vector<256x128xbf16>,
    %c0_5 = arith.constant 0 : index
    %c0_6 = arith.constant 0 : index
    %5 = vector.load %arg3[%c0_5, %c0_6] : memref<128x128xbf16, #tpu.memory_space<vmem>>, vector<128x128xbf16>
    %cst_7 = arith.constant dense<0.000000e+00> : vector<256x128xf32>
    %6 = tpu.matmul %0, %5, %cst_7 {dimension_numbers = #tpu.dot_dimension_numbers<[1], [0], [0], [1], [0, 0, 1, 1], [], []>} : vector<256x128xbf16>, vector<128x128xbf16>, vector<256x128xf32> -> vector<256x128xf32>
    %c0_8 = arith.constant 0 : index
    %c0_9 = arith.constant 0 : index
    %7 = vector.load %arg4[%c0_8, %c0_9] : memref<1x128xf32, #tpu.memory_space<vmem>>, vector<1x128xf32>
    %8 = vector.broadcast %7 : vector<1x128xf32> to vector<256x128xf32>
    %9 = arith.addf %6, %8 : vector<256x128xf32>
    %c0_10 = arith.constant 0 : index
    %c0_11 = arith.constant 0 : index
    %10 = vector.load %arg6[%c0_10, %c0_11] : memref<256x128xf32, #tpu.memory_space<vmem>>, vector<256x128xf32>
    tpu.vector_store %arg6[%c0_10, %c0_11], %9 {strides = array<i32>} : memref<256x128xf32, #tpu.memory_space<vmem>>, vector<256x128xf32>,
    return
  }
  func.func @transform_0(%arg0: i32) -> (i32, i32) {
    %c0_i32 = arith.constant 0 : i32
    %c0_i32_0 = arith.constant 0 : i32
    return %arg0, %c0_i32 : i32, i32
  }
  func.func @transform_1(%arg0: i32) -> (i32, i32) {
    %c0_i32 = arith.constant 0 : i32
    %c0_i32_0 = arith.constant 0 : i32
    %c0_i32_1 = arith.constant 0 : i32
    return %c0_i32, %c0_i32_0 : i32, i32
  }
  func.func @transform_2(%arg0: i32) -> (i32, i32) {
    %c0_i32 = arith.constant 0 : i32
    %c0_i32_0 = arith.constant 0 : i32
    %c0_i32_1 = arith.constant 0 : i32
    return %c0_i32, %c0_i32_0 : i32, i32
  }
  func.func @transform_3(%arg0: i32) -> (i32, i32) {
    %c0_i32 = arith.constant 0 : i32
    %c0_i32_0 = arith.constant 0 : i32
    %c0_i32_1 = arith.constant 0 : i32
    return %c0_i32, %c0_i32_0 : i32, i32
  }
  func.func @transform_4(%arg0: i32) -> (i32, i32) {
    %c0_i32 = arith.constant 0 : i32
    %c0_i32_0 = arith.constant 0 : i32
    return %arg0, %c0_i32 : i32, i32
  }
  func.func @transform_5(%arg0: i32) -> (i32, i32) {
    %c0_i32 = arith.constant 0 : i32
    %c0_i32_0 = arith.constant 0 : i32
    return %arg0, %c0_i32 : i32, i32
  }
}

</mosaic_0001>

<bundles_post_ra>
// kernel: tpu_custom_call.1
= control target key start
LH: loop header
LB: loop body
LE: loop exit
PB: predicated region body
PF: predicated region fallthrough
CT: control target
= control target key end

     0   :  { %11 = vsyncpa [#allocation3], 0  ;;  %s1883_s0 = inlined_call_operand.hbm [shape: bf16[768,128], index: 0, kind: input, shape index: {}]   ;;  %s1884_s1 = inlined_call_operand.hbm [shape: bf16[128,128], index: 1, kind: input, shape index: {}]   ;;  %s1885_s2 = inlined_call_operand.hbm [shape: bf16[128,128], index: 2, kind: input, shape index: {}]   ;;  %s1886_s3 = inlined_call_operand.vmem [shape: f32[1,128], index: 3, kind: input, shape index: {}]   ;;  %s1887_s4 = inlined_call_operand.hbm [shape: bf16[768,128], index: 4, kind: output, shape index: {0}]   ;;  %s1888_s5 = inlined_call_operand.hbm [shape: f32[768,128], index: 5, kind: output, shape index: {1}]  }
   0x1   :  { %13 = vsyncpa [#allocation3 + $0x1], 0 }
   0x2   :  { %14 = vsyncpa [#allocation6], 0 }
   0x3   :  { %15 = vsyncpa [#allocation4], 0 }
   0x4   :  { %17 = vsyncpa [#allocation4 + $0x1], 0 }
   0x5   :  { %18 = vsyncpa [#allocation10], 0 }
   0x6   :  { %20 = vsyncpa [#allocation10 + $0x1], 0  ;;  %s1596_s18 = smov 0   ;;  %s1598_s19 = smov 0  }
   0x7   :  { %s1600_s20 = smov 0   ;;  %s1602_s21 = smov 0  }
   0x8 LB: > { %s1617_s22 = sadd.s32 4294967295, %s1556_s21   ;;  %s989_s23 = sadd.s32 4294967294, %s1556_s21   ;;  %s1556_s21 = sphi %s1602_s21, %s1899_s21   ;;  %s1552_s20 = sphi %s1600_s20, %s1898_s20   ;;  %s1548_s19 = sphi %s1598_s19, %s1897_s19   ;;  %s1544_s18 = sphi %s1596_s18, %s1896_s18  }
   0x9   : > { %p46_p0 = scmp.ne.s32.totalorder %s1548_s19, %s1544_s18  ;;  %p47_p1 = scmp.eq.s32.totalorder %s1617_s22, 0 }
   0xa   : > { %p133_p2 = scmp.eq.s32.totalorder %s1617_s22, 2  ;;  %p139_p3 = scmp.eq.s32.totalorder %s989_s23, 2 }
   0xb   : > { %p1626_p4 = por %p47_p1, %p46_p0  ;;  %p990_p5 = scmp.ge.s32.totalorder %s1556_s21, 1 }
   0xc   : > { %p1631_p6 = por %p139_p3, %p46_p0  ;;  %p172_p7 = scmp.lt.s32.totalorder %s1556_s21, 4 }
   0xd   : > { %s183_s28 = sshll.u32 %s1884_s1, 4  ;;  %s1558_s30 = smov [#allocation5]   ;;  %s184_s28 = int_to_ptr.hbm [resolvable:$true] %s183_s28 }
   0xe   : > { %p1639_p8 = pnand %p990_p5, %p172_p7  ;;  %s185_s6 = sshll.u32 %s1558_s30, 4  ;;  %s186_s6 = int_to_ptr.vmem [resolvable:$true] %s185_s6 }
   0xf   : > { %s197_s9 = sshll.u32 %s1885_s2, 4  ;;  %s1889_s10 = smov 64   ;;  %s198_s9 = int_to_ptr.hbm [resolvable:$true] %s197_s9 }
  0x10   : > { %p1299_p9 = pneg %p1639_p8  ;;  %s1560_s11 = smov 4  }
  0x11   : > { %s1561_s12 = smov [#allocation7]   ;;  %s1657_s14 = sadd.s32 1, %s1556_s21  }
  0x12   : > { %p1300_p10 = pnand %p1299_p9, %p47_p1  ;;  %s199_s13 = sshll.u32 %s1561_s12, 4  ;;  %s200_s13 = int_to_ptr.vmem [resolvable:$true] %s199_s13 }
  0x13   : > { %s33_s15 = sadd.s32 1, %s1552_s20  ;;  %s30_s16 = ssub.s32 %s1556_s21, %s1657_s14 }
  0x14   : > { %1302 = dma.hbm_to_vmem [thread:$0]  (!%p1300_p10), %s184_s28, 1024, %s186_s6, [#allocation6], %s1889_s10, %s1889_s10, %s1560_s11  }
  0x15   : > { %1305 = dma.hbm_to_vmem [thread:$0]  (!%p1300_p10), %s198_s9, 1024, %s200_s13, [#allocation6], %s1889_s10, %s1889_s10, %s1560_s11  }
  0x16   : > { %p40_p11 = scmp.ne.s32.totalorder %s1552_s20, %s1548_s19  ;;  %p31_p12 = scmp.eq.s32.totalorder %s30_s16, 0 }
  0x17   : > { %p41_p13 = scmp.eq.s32.totalorder %s1556_s21, 0  ;;  %p1319_p3 = scmp.lt.s32.totalorder %s1556_s21, 3 }
  0x18   : > { %p1667_p0 = por %p133_p2, %p40_p11  ;;  %s216_s26 = sand.u32 1, %s1552_s20  }
  0x19   : > { %s1673_s23 = scalar_select %p31_p12, %s1552_s20, %s33_s15  }
  0x1a   : > { %p42_p5 = por %p41_p13, %p40_p11  ;;  %s994_s27 = sshll.u32 %s216_s26, 7 }
  0x1b   : > { %s1139_s28 = sshll.u32 %s1556_s21, 7  ;;  %s220_s8 = scalar_lea.vmem [#allocation2], %s994_s27 }
  0x1c   : > { %s225_s7 = scalar_lea.hbm %s1883_s0, %s1139_s28  ;;  %s228_s9 = sshll.u32 %s220_s8, 4  ;;  %s229_s9 = int_to_ptr.vmem [resolvable:$true] %s228_s9 }
  0x1d   : > { %s226_s12 = sshll.u32 %s225_s7, 4  ;;  %p1680_p2 = pnand %p1319_p3, %p42_p5  ;;  %s227_s12 = int_to_ptr.hbm [resolvable:$true] %s226_s12 }
  0x1e   : > { %s217_s15 = scalar_lea.sflag [#allocation3], %s216_s26  ;;  %s1424_s16 = sshra.s32 %s227_s12, 4  ;;  %s1425_s16 = int_to_ptr.hbm [resolvable:$true] %s1424_s16 }
  0x1f   : > { %s1426_s10 = scalar_lea.hbm %s1425_s16, 128  ;;  %p1428_p9 = pneg %p1680_p2 }
  0x20   : > { %p1427_p7 = scmp.ne.s32.totalorder %s1425_s16, %s1426_s10  ;;  %s1431_s30 = scalar_lea.hbm %s1883_s0, 384 }
  0x21   : > { %p1432_p12 = scmp.lt.s32.totalorder %s1425_s16, %s1883_s0  ;;  %p1433_p13 = scmp.lt.s32.totalorder %s1431_s30, %s1426_s10 }
  0x22   : > { %p1429_p10 = pnand %p1428_p9, %p1427_p7 }
  0x23   : > { %p1434_p3 = por %p1433_p13, %p1432_p12 }
  0x24   : > { %p1430_p11 = pneg %p1429_p10 }
  0x26   : > { %p1435_p5 = pnand %p1434_p3, %p1430_p11 }
  0x28   : > { %1438 = shalt.err (!%p1435_p5)
}
  0x29   : > { %s1895_s26 = smov 64   ;;  %240 = sbr.rel (%p1639_p8) target bundleno = 353 (0x161), region = 36 }
  0x2a   : > { %1309 = dma.hbm_to_vmem [thread:$0]  (!%p1680_p2), %s227_s12, 2048, %s229_s9, %s217_s15, %s1895_s26, %s1895_s26, %s1560_s11  }
  0x2b   : > { %s1700_s8 = sand.u32 (!%p1639_p8), 1, %s1548_s19  }
  0x2c   : > { %s998_s10 = sshll.u32 (!%p1639_p8), %s1700_s8, 7  ;;  %s243_s16 = scalar_lea.sflag (!%p1639_p8), [#allocation3], %s1700_s8 }
  0x2d   : > { %s1706_s28 = scalar_lea.vmem (!%p1639_p8), [#allocation2], %s998_s10 }
  0x2e   : > { %1527 = dma.done.wait (%p1626_p4), %s243_s16, 2048  }
  0x2f   : > { %1529 = vsyncadd (%p1626_p4), %s243_s16, 4294965248 }
  0x30   : > { %1531 = dma.done.wait (%p47_p1), [#allocation6], 2048  }
  0x31   : > { %1533 = vsyncadd (%p47_p1), [#allocation6], 4294965248  ;;  %v1163_v0 = vld [vmem:[#allocation5 + $0x38] sm:$0xff]  ;;  %v1162_v2 = vld [vmem:[#allocation5 + $0x30] sm:$0xff]  ;;  %s1002_s24 = sshll.u32 %s1700_s8, 8  ;;  %s1747_s12 = scalar_lea.vmem [#allocation8], %s998_s10 }
  0x32   : > { %v1171_v1 = vld [vmem:[#allocation7 + $0x38] sm:$0xff]  ;;  %484 = vmatpush.bf16.msra.mxu0 %v1163_v0  ;;  %1269 = vmatpush.bf16.msra.mxu2 %v1163_v0  ;;  %v1170_v3 = vld [vmem:[#allocation7 + $0x30] sm:$0xff]  ;;  %v1161_v4 = vld [vmem:[#allocation5 + $0x28] sm:$0xff]  ;;  %s1739_s9 = scalar_lea.vmem [#allocation9], %s1002_s24  ;;  %s1172_s13 = sshll.u32 %s1617_s22, 7 }
  0x33   : > { %705 = vmatpush.bf16.msra.mxu1 %v1171_v1  ;;  %1277 = vmatpush.bf16.msra.mxu3 %v1171_v1  ;;  %v1169_v5 = vld [vmem:[#allocation7 + $0x28] sm:$0xff]  ;;  %v1160_v6 = vld [vmem:[#allocation5 + $0x20] sm:$0xff]  ;;  %v1159_v8 = vld [vmem:[#allocation5 + $0x18] sm:$0xff]  ;;  %s1173_s15 = sshll.u32 %s1617_s22, 8  ;;  %s843_s6 = scalar_lea.hbm %s1887_s4, %s1172_s13 }
  0x34   : > { %v1168_v7 = vld [vmem:[#allocation7 + $0x20] sm:$0xff]  ;;  %v1167_v9 = vld [vmem:[#allocation7 + $0x18] sm:$0xff]  ;;  %v1158_v10 = vld [vmem:[#allocation5 + $0x10] sm:$0xff]  ;;  %s844_s7 = sshll.u32 %s1747_s12, 4  ;;  %s860_s16 = scalar_lea.hbm %s1888_s5, %s1173_s15  ;;  %s1830_s7 = int_to_ptr.vmem [resolvable:$true] %s844_s7 }
  0x35   : > { %v1166_v11 = vld [vmem:[#allocation7 + $0x10] sm:$0xff]  ;;  %v1157_v12 = vld [vmem:[#allocation5 + $0x8] sm:$0xff]  ;;  %v1156_v14 = vld [vmem:[#allocation5] sm:$0xff]  ;;  %s846_s22 = sshll.u32 %s843_s6, 4  ;;  %s863_s24 = sshll.u32 %s860_s16, 4  ;;  %s847_s22 = int_to_ptr.hbm [resolvable:$true] %s846_s22  ;;  %s1836_s24 = int_to_ptr.hbm [resolvable:$true] %s863_s24 }
  0x36   : > { %485 = vmatpush.bf16.msra.mxu0 %v1162_v2  ;;  %1270 = vmatpush.bf16.msra.mxu2 %v1162_v2  ;;  %v1165_v13 = vld [vmem:[#allocation7 + $0x8] sm:$0xff]  ;;  %v1164_v15 = vld [vmem:[#allocation7] sm:$0xff]  ;;  %v1142_v20 = vld [vmem:[%s1706_s28 + $0x10] sm:$0xff]  ;;  %s827_s29 = scalar_lea.sflag [#allocation4], %s1700_s8  ;;  %s1468_s11 = sshra.s32 %s847_s22, 4  ;;  %s1469_s11 = int_to_ptr.hbm [resolvable:$true] %s1468_s11 }
  0x37   : > { %706 = vmatpush.bf16.msra.mxu1 %v1170_v3  ;;  %1278 = vmatpush.bf16.msra.mxu3 %v1170_v3  ;;  %v1140_v16 = vld [vmem:[%s1706_s28] sm:$0xff]  ;;  %v1141_v18 = vld [vmem:[%s1706_s28 + $0x8] sm:$0xff]  ;;  %v1150_v21 = vld [vmem:[%s1706_s28 + $0x50] sm:$0xff]  ;;  %s1470_s13 = scalar_lea.hbm %s1469_s11, 128  ;;  %s1474_s30 = scalar_lea.hbm %s1887_s4, 384 }
  0x38   : > { %v1148_v17 = vld [vmem:[%s1706_s28 + $0x40] sm:$0xff]  ;;  %v1149_v19 = vld [vmem:[%s1706_s28 + $0x48] sm:$0xff]  ;;  %v1143_v22 = vld [vmem:[%s1706_s28 + $0x18] sm:$0xff]  ;;  %p1471_p1 = scmp.ne.s32.totalorder %s1469_s11, %s1470_s13  ;;  %p1475_p2 = scmp.lt.s32.totalorder %s1469_s11, %s1887_s4 }
  0x39   : > { %v1151_v23 = vld [vmem:[%s1706_s28 + $0x58] sm:$0xff]  ;;  %v1144_v24 = vld [vmem:[%s1706_s28 + $0x20] sm:$0xff]  ;;  %v1145_v26 = vld [vmem:[%s1706_s28 + $0x28] sm:$0xff]  ;;  %p1476_p7 = scmp.lt.s32.totalorder %s1474_s30, %s1470_s13 }
  0x3a   : > { %486 = vmatpush.bf16.msra.mxu0 %v1161_v4  ;;  %1271 = vmatpush.bf16.msra.mxu2 %v1161_v4  ;;  %v1152_v25 = vld [vmem:[%s1706_s28 + $0x60] sm:$0xff]  ;;  %v1153_v27 = vld [vmem:[%s1706_s28 + $0x68] sm:$0xff]  ;;  %v1146_v28 = vld [vmem:[%s1706_s28 + $0x30] sm:$0xff]  ;;  %p1472_p4 = pnand %p1471_p1, %p1667_p0 }
  0x3b   : > { %707 = vmatpush.bf16.msra.mxu1 %v1169_v5  ;;  %1279 = vmatpush.bf16.msra.mxu3 %v1169_v5  ;;  %v1154_v29 = vld [vmem:[%s1706_s28 + $0x70] sm:$0xff]  ;;  %v1147_v30 = vld [vmem:[%s1706_s28 + $0x38] sm:$0xff]  ;;  %v1736_v32 = vld [vmem:[%s1886_s3] ss:$0 sm:$0xff]  ;;  %p1477_p9 = por %p1476_p7, %p1475_p2 }
  0x3c   : > { %v1155_v31 = vld [vmem:[%s1706_s28 + $0x78] sm:$0xff]  ;;  %s861_s28 = sshll.u32 %s1739_s9, 4  ;;  %p1473_p8 = pneg %p1472_p4  ;;  %s1834_s28 = int_to_ptr.vmem [resolvable:$true] %s861_s28 }
  0x3e   : > { %487 = vmatpush.bf16.msra.mxu0 %v1160_v6  ;;  %1272 = vmatpush.bf16.msra.mxu2 %v1160_v6  ;;  %p1478_p10 = pnand %p1477_p9, %p1473_p8 }
  0x3f   : > { %708 = vmatpush.bf16.msra.mxu1 %v1168_v7  ;;  %1280 = vmatpush.bf16.msra.mxu3 %v1168_v7 }
  0x42   : > { %488 = vmatpush.bf16.msra.mxu0 %v1159_v8  ;;  %1273 = vmatpush.bf16.msra.mxu2 %v1159_v8 }
  0x43   : > { %709 = vmatpush.bf16.msra.mxu1 %v1167_v9  ;;  %1281 = vmatpush.bf16.msra.mxu3 %v1167_v9 }
  0x46   : > { %489 = vmatpush.bf16.msra.mxu0 %v1158_v10  ;;  %1274 = vmatpush.bf16.msra.mxu2 %v1158_v10 }
  0x47   : > { %710 = vmatpush.bf16.msra.mxu1 %v1166_v11  ;;  %1282 = vmatpush.bf16.msra.mxu3 %v1166_v11 }
  0x4a   : > { %490 = vmatpush.bf16.msra.mxu0 %v1157_v12  ;;  %1275 = vmatpush.bf16.msra.mxu2 %v1157_v12 }
  0x4b   : > { %711 = vmatpush.bf16.msra.mxu1 %v1165_v13  ;;  %1283 = vmatpush.bf16.msra.mxu3 %v1165_v13 }
  0x4e   : > { %491 = vmatpush.bf16.msra.mxu0 %v1156_v14  ;;  %1276 = vmatpush.bf16.msra.mxu2 %v1156_v14 }
  0x4f   : > { %712 = vmatpush.bf16.msra.mxu1 %v1164_v15  ;;  %1284 = vmatpush.bf16.msra.mxu3 %v1164_v15 }
  0x51   : > { %492 = vmatmul.bf16.vlgmr.msra.gmra.mxu0 %v1140_v16  ;;  %532 = vmatmul.bf16.vlgmr.msra.gmra.mxu2 %v1148_v17 }
  0x52   : > { %713 = vmatmul.bf16.vlgmr.msra.gmra.mxu1 %v1140_v16  ;;  %753 = vmatmul.bf16.vlgmr.msra.gmra.mxu3 %v1148_v17 }
  0x61   : > { %497 = vmatmul.bf16.gmra.mxu0 %v1141_v18  ;;  %537 = vmatmul.bf16.gmra.mxu2 %v1149_v19 }
  0x62   : > { %718 = vmatmul.bf16.gmra.mxu1 %v1141_v18  ;;  %758 = vmatmul.bf16.gmra.mxu3 %v1149_v19 }
  0x71   : > { %502 = vmatmul.bf16.gmra.mxu0 %v1142_v20  ;;  %542 = vmatmul.bf16.gmra.mxu2 %v1150_v21 }
  0x72   : > { %723 = vmatmul.bf16.gmra.mxu1 %v1142_v20  ;;  %763 = vmatmul.bf16.gmra.mxu3 %v1150_v21 }
  0x81   : > { %507 = vmatmul.bf16.gmra.mxu0 %v1143_v22  ;;  %547 = vmatmul.bf16.gmra.mxu2 %v1151_v23 }
  0x82   : > { %728 = vmatmul.bf16.gmra.mxu1 %v1143_v22  ;;  %768 = vmatmul.bf16.gmra.mxu3 %v1151_v23 }
  0x91   : > { %512 = vmatmul.bf16.gmra.mxu0 %v1144_v24  ;;  %552 = vmatmul.bf16.gmra.mxu2 %v1152_v25 }
  0x92   : > { %733 = vmatmul.bf16.gmra.mxu1 %v1144_v24  ;;  %773 = vmatmul.bf16.gmra.mxu3 %v1152_v25 }
  0xa1   : > { %517 = vmatmul.bf16.gmra.mxu0 %v1145_v26  ;;  %557 = vmatmul.bf16.gmra.mxu2 %v1153_v27 }
  0xa2   : > { %738 = vmatmul.bf16.gmra.mxu1 %v1145_v26  ;;  %778 = vmatmul.bf16.gmra.mxu3 %v1153_v27 }
  0xb1   : > { %522 = vmatmul.bf16.gmra.mxu0 %v1146_v28  ;;  %562 = vmatmul.bf16.gmra.mxu2 %v1154_v29 }
  0xb2   : > { %743 = vmatmul.bf16.gmra.mxu1 %v1146_v28  ;;  %783 = vmatmul.bf16.gmra.mxu3 %v1154_v29 }
  0xc1   : > { %527 = vmatmul.bf16.gmra.mxu0 %v1147_v30  ;;  %567 = vmatmul.bf16.gmra.mxu2 %v1155_v31 }
  0xc2   : > { %748 = vmatmul.bf16.gmra.mxu1 %v1147_v30  ;;  %788 = vmatmul.bf16.gmra.mxu3 %v1155_v31 }
  0xce   : > { %v493_v33 = vpop.f32.mrf.mxu0 }
  0xcf   : > { %v714_v34 = vpop.f32.mrf.mxu1 }
  0xd0   : > { %v715_v35 = vadd.f32 %v1736_v32, %v714_v34 }
  0xd2   : > { %794 = vst [vmem:[%s1739_s9] sm:$0xff] %v715_v35 }
  0xd4   : > { %v533_v36 = vpop.f32.mrf.mxu2 }
  0xd5   : > { %v754_v37 = vpop.f32.mrf.mxu3 }
  0xd6   : > { %v755_v38 = vadd.f32 %v1736_v32, %v754_v37  ;;  %v495_v39 = vpop.f32.mrf.mxu0 }
  0xd7   : > { %v1177_v40 = vpack.c.bf16 %v495_v39, %v493_v33  ;;  %v716_v41 = vpop.f32.mrf.mxu1 }
  0xd8   : > { %810 = vst [vmem:[%s1739_s9 + $0x80] sm:$0xff] %v755_v38  ;;  %v717_v42 = vadd.f32 %v1736_v32, %v716_v41 }
  0xd9   : > { %1178 = vst [vmem:[%s1747_s12] sm:$0xff] %v1177_v40  }
  0xda   : > { %795 = vst [vmem:[%s1739_s9 + $0x8] sm:$0xff] %v717_v42 }
  0xdc   : > { %v535_v43 = vpop.f32.mrf.mxu2 }
  0xdd   : > { %v1217_v44 = vpack.c.bf16 %v535_v43, %v533_v36  ;;  %v756_v45 = vpop.f32.mrf.mxu3 }
  0xde   : > { %v757_v46 = vadd.f32 %v1736_v32, %v756_v45  ;;  %v498_v47 = vpop.f32.mrf.mxu0 }
  0xdf   : > { %1261 = vst [vmem:[%s1747_s12 + $0x40] sm:$0xff] %v1217_v44   ;;  %v719_v48 = vpop.f32.mrf.mxu1 }
  0xe0   : > { %811 = vst [vmem:[%s1739_s9 + $0x88] sm:$0xff] %v757_v46  ;;  %v720_v49 = vadd.f32 %v1736_v32, %v719_v48 }
  0xe2   : > { %796 = vst [vmem:[%s1739_s9 + $0x10] sm:$0xff] %v720_v49 }
  0xe4   : > { %v538_v50 = vpop.f32.mrf.mxu2 }
  0xe5   : > { %v759_v51 = vpop.f32.mrf.mxu3 }
  0xe6   : > { %v760_v52 = vadd.f32 %v1736_v32, %v759_v51  ;;  %v500_v53 = vpop.f32.mrf.mxu0 }
  0xe7   : > { %v1182_v54 = vpack.c.bf16 %v500_v53, %v498_v47  ;;  %v721_v55 = vpop.f32.mrf.mxu1 }
  0xe8   : > { %812 = vst [vmem:[%s1739_s9 + $0x90] sm:$0xff] %v760_v52  ;;  %v722_v56 = vadd.f32 %v1736_v32, %v721_v55 }
  0xe9   : > { %1254 = vst [vmem:[%s1747_s12 + $0x8] sm:$0xff] %v1182_v54  }
  0xea   : > { %797 = vst [vmem:[%s1739_s9 + $0x18] sm:$0xff] %v722_v56 }
  0xec   : > { %v540_v57 = vpop.f32.mrf.mxu2 }
  0xed   : > { %v1222_v58 = vpack.c.bf16 %v540_v57, %v538_v50  ;;  %v761_v59 = vpop.f32.mrf.mxu3 }
  0xee   : > { %v762_v60 = vadd.f32 %v1736_v32, %v761_v59  ;;  %v503_v61 = vpop.f32.mrf.mxu0 }
  0xef   : > { %1262 = vst [vmem:[%s1747_s12 + $0x48] sm:$0xff] %v1222_v58   ;;  %v724_v62 = vpop.f32.mrf.mxu1 }
  0xf0   : > { %813 = vst [vmem:[%s1739_s9 + $0x98] sm:$0xff] %v762_v60  ;;  %v725_v63 = vadd.f32 %v1736_v32, %v724_v62 }
  0xf2   : > { %798 = vst [vmem:[%s1739_s9 + $0x20] sm:$0xff] %v725_v63 }
  0xf4   : > { %v543_v0 = vpop.f32.mrf.mxu2 }
  0xf5   : > { %v764_v1 = vpop.f32.mrf.mxu3 }
  0xf6   : > { %v765_v2 = vadd.f32 %v1736_v32, %v764_v1  ;;  %v505_v3 = vpop.f32.mrf.mxu0 }
  0xf7   : > { %v1187_v4 = vpack.c.bf16 %v505_v3, %v503_v61  ;;  %v726_v5 = vpop.f32.mrf.mxu1 }
  0xf8   : > { %814 = vst [vmem:[%s1739_s9 + $0xa0] sm:$0xff] %v765_v2  ;;  %v727_v6 = vadd.f32 %v1736_v32, %v726_v5 }
  0xf9   : > { %1255 = vst [vmem:[%s1747_s12 + $0x10] sm:$0xff] %v1187_v4  }
  0xfa   : > { %799 = vst [vmem:[%s1739_s9 + $0x28] sm:$0xff] %v727_v6 }
  0xfc   : > { %v545_v7 = vpop.f32.mrf.mxu2 }
  0xfd   : > { %v1227_v8 = vpack.c.bf16 %v545_v7, %v543_v0  ;;  %v766_v9 = vpop.f32.mrf.mxu3 }
  0xfe   : > { %v767_v10 = vadd.f32 %v1736_v32, %v766_v9  ;;  %v508_v11 = vpop.f32.mrf.mxu0 }
  0xff   : > { %1263 = vst [vmem:[%s1747_s12 + $0x50] sm:$0xff] %v1227_v8   ;;  %v729_v12 = vpop.f32.mrf.mxu1 }
 0x100   : > { %815 = vst [vmem:[%s1739_s9 + $0xa8] sm:$0xff] %v767_v10  ;;  %v730_v13 = vadd.f32 %v1736_v32, %v729_v12 }
 0x102   : > { %800 = vst [vmem:[%s1739_s9 + $0x30] sm:$0xff] %v730_v13 }
 0x104   : > { %v548_v14 = vpop.f32.mrf.mxu2 }
 0x105   : > { %v769_v15 = vpop.f32.mrf.mxu3 }
 0x106   : > { %v770_v16 = vadd.f32 %v1736_v32, %v769_v15  ;;  %v510_v17 = vpop.f32.mrf.mxu0 }
 0x107   : > { %v1192_v18 = vpack.c.bf16 %v510_v17, %v508_v11  ;;  %v731_v19 = vpop.f32.mrf.mxu1 }
 0x108   : > { %816 = vst [vmem:[%s1739_s9 + $0xb0] sm:$0xff] %v770_v16  ;;  %v732_v20 = vadd.f32 %v1736_v32, %v731_v19 }
 0x109   : > { %1256 = vst [vmem:[%s1747_s12 + $0x18] sm:$0xff] %v1192_v18  }
 0x10a   : > { %801 = vst [vmem:[%s1739_s9 + $0x38] sm:$0xff] %v732_v20 }
 0x10c   : > { %v550_v21 = vpop.f32.mrf.mxu2 }
 0x10d   : > { %v1232_v22 = vpack.c.bf16 %v550_v21, %v548_v14  ;;  %v771_v23 = vpop.f32.mrf.mxu3 }
 0x10e   : > { %v772_v24 = vadd.f32 %v1736_v32, %v771_v23  ;;  %v513_v25 = vpop.f32.mrf.mxu0 }
 0x10f   : > { %1264 = vst [vmem:[%s1747_s12 + $0x58] sm:$0xff] %v1232_v22   ;;  %v734_v26 = vpop.f32.mrf.mxu1 }
 0x110   : > { %817 = vst [vmem:[%s1739_s9 + $0xb8] sm:$0xff] %v772_v24  ;;  %v735_v27 = vadd.f32 %v1736_v32, %v734_v26 }
 0x112   : > { %802 = vst [vmem:[%s1739_s9 + $0x40] sm:$0xff] %v735_v27 }
 0x114   : > { %v553_v28 = vpop.f32.mrf.mxu2 }
 0x115   : > { %v774_v29 = vpop.f32.mrf.mxu3 }
 0x116   : > { %v775_v30 = vadd.f32 %v1736_v32, %v774_v29  ;;  %v515_v31 = vpop.f32.mrf.mxu0 }
 0x117   : > { %v1197_v33 = vpack.c.bf16 %v515_v31, %v513_v25  ;;  %v736_v34 = vpop.f32.mrf.mxu1 }
 0x118   : > { %818 = vst [vmem:[%s1739_s9 + $0xc0] sm:$0xff] %v775_v30  ;;  %v737_v35 = vadd.f32 %v1736_v32, %v736_v34 }
 0x119   : > { %1257 = vst [vmem:[%s1747_s12 + $0x20] sm:$0xff] %v1197_v33  }
 0x11a   : > { %803 = vst [vmem:[%s1739_s9 + $0x48] sm:$0xff] %v737_v35 }
 0x11c   : > { %v555_v36 = vpop.f32.mrf.mxu2 }
 0x11d   : > { %v1237_v37 = vpack.c.bf16 %v555_v36, %v553_v28  ;;  %v776_v38 = vpop.f32.mrf.mxu3 }
 0x11e   : > { %v777_v39 = vadd.f32 %v1736_v32, %v776_v38  ;;  %v518_v40 = vpop.f32.mrf.mxu0 }
 0x11f   : > { %1265 = vst [vmem:[%s1747_s12 + $0x60] sm:$0xff] %v1237_v37   ;;  %v739_v41 = vpop.f32.mrf.mxu1 }
 0x120   : > { %819 = vst [vmem:[%s1739_s9 + $0xc8] sm:$0xff] %v777_v39  ;;  %v740_v42 = vadd.f32 %v1736_v32, %v739_v41 }
 0x122   : > { %804 = vst [vmem:[%s1739_s9 + $0x50] sm:$0xff] %v740_v42 }
 0x124   : > { %v558_v43 = vpop.f32.mrf.mxu2 }
 0x125   : > { %v779_v44 = vpop.f32.mrf.mxu3 }
 0x126   : > { %v780_v45 = vadd.f32 %v1736_v32, %v779_v44  ;;  %v520_v46 = vpop.f32.mrf.mxu0 }
 0x127   : > { %v1202_v47 = vpack.c.bf16 %v520_v46, %v518_v40  ;;  %v741_v48 = vpop.f32.mrf.mxu1 }
 0x128   : > { %820 = vst [vmem:[%s1739_s9 + $0xd0] sm:$0xff] %v780_v45  ;;  %v742_v49 = vadd.f32 %v1736_v32, %v741_v48 }
 0x129   : > { %1258 = vst [vmem:[%s1747_s12 + $0x28] sm:$0xff] %v1202_v47  }
 0x12a   : > { %805 = vst [vmem:[%s1739_s9 + $0x58] sm:$0xff] %v742_v49 }
 0x12c   : > { %v560_v50 = vpop.f32.mrf.mxu2 }
 0x12d   : > { %v1242_v51 = vpack.c.bf16 %v560_v50, %v558_v43  ;;  %v781_v52 = vpop.f32.mrf.mxu3 }
 0x12e   : > { %v782_v53 = vadd.f32 %v1736_v32, %v781_v52  ;;  %v523_v54 = vpop.f32.mrf.mxu0 }
 0x12f   : > { %1266 = vst [vmem:[%s1747_s12 + $0x68] sm:$0xff] %v1242_v51   ;;  %v744_v55 = vpop.f32.mrf.mxu1 }
 0x130   : > { %821 = vst [vmem:[%s1739_s9 + $0xd8] sm:$0xff] %v782_v53  ;;  %v745_v56 = vadd.f32 %v1736_v32, %v744_v55 }
 0x132   : > { %806 = vst [vmem:[%s1739_s9 + $0x60] sm:$0xff] %v745_v56 }
 0x134   : > { %v563_v57 = vpop.f32.mrf.mxu2 }
 0x135   : > { %v784_v58 = vpop.f32.mrf.mxu3 }
 0x136   : > { %v785_v59 = vadd.f32 %v1736_v32, %v784_v58  ;;  %v525_v60 = vpop.f32.mrf.mxu0 }
 0x137   : > { %v1207_v61 = vpack.c.bf16 %v525_v60, %v523_v54  ;;  %v746_v62 = vpop.f32.mrf.mxu1 }
 0x138   : > { %822 = vst [vmem:[%s1739_s9 + $0xe0] sm:$0xff] %v785_v59  ;;  %v747_v63 = vadd.f32 %v1736_v32, %v746_v62 }
 0x139   : > { %1259 = vst [vmem:[%s1747_s12 + $0x30] sm:$0xff] %v1207_v61  }
 0x13a   : > { %807 = vst [vmem:[%s1739_s9 + $0x68] sm:$0xff] %v747_v63 }
 0x13c   : > { %v565_v0 = vpop.f32.mrf.mxu2 }
 0x13d   : > { %v1247_v1 = vpack.c.bf16 %v565_v0, %v563_v57  ;;  %v786_v2 = vpop.f32.mrf.mxu3 }
 0x13e   : > { %v787_v3 = vadd.f32 %v1736_v32, %v786_v2  ;;  %v528_v4 = vpop.f32.mrf.mxu0 }
 0x13f   : > { %1267 = vst [vmem:[%s1747_s12 + $0x70] sm:$0xff] %v1247_v1   ;;  %v749_v5 = vpop.f32.mrf.mxu1 }
 0x140   : > { %823 = vst [vmem:[%s1739_s9 + $0xe8] sm:$0xff] %v787_v3  ;;  %v750_v6 = vadd.f32 %v1736_v32, %v749_v5 }
 0x142   : > { %808 = vst [vmem:[%s1739_s9 + $0x70] sm:$0xff] %v750_v6 }
 0x144   : > { %v568_v7 = vpop.f32.mrf.mxu2 }
 0x145   : > { %v789_v8 = vpop.f32.mrf.mxu3 }
 0x146   : > { %v790_v9 = vadd.f32 %v1736_v32, %v789_v8  ;;  %v530_v10 = vpop.f32.mrf.mxu0 }
 0x147   : > { %v1212_v11 = vpack.c.bf16 %v530_v10, %v528_v4  ;;  %v751_v12 = vpop.f32.mrf.mxu1 }
 0x148   : > { %824 = vst [vmem:[%s1739_s9 + $0xf0] sm:$0xff] %v790_v9  ;;  %v752_v13 = vadd.f32 %v1736_v32, %v751_v12 }
 0x149   : > { %1260 = vst [vmem:[%s1747_s12 + $0x38] sm:$0xff] %v1212_v11  }
 0x14a   : > { %809 = vst [vmem:[%s1739_s9 + $0x78] sm:$0xff] %v752_v13 }
 0x14c   : > { %v570_v14 = vpop.f32.mrf.mxu2 }
 0x14d   : > { %v1252_v15 = vpack.c.bf16 %v570_v14, %v568_v7  ;;  %v791_v16 = vpop.f32.mrf.mxu3 }
 0x14e   : > { %v792_v17 = vadd.f32 %v1736_v32, %v791_v16 }
 0x14f   : > { %1268 = vst [vmem:[%s1747_s12 + $0x78] sm:$0xff] %v1252_v15  }
 0x150   : > { %825 = vst [vmem:[%s1739_s9 + $0xf8] sm:$0xff] %v792_v17 }
 0x151   : > { %1481 = shalt.err (!%p1478_p10)
}
 0x152   : > { %s1562_s9 = smov 64   ;;  %s1563_s12 = smov 4  }
 0x153   : > { %1295 = dma.vmem_to_hbm [thread:$0]  (%p1667_p0), %s1830_s7, 2048, %s847_s22, %s827_s29, %s1562_s9, %s1562_s9, %s1563_s12  }
 0x154   : > { %s832_s10 = scalar_lea.sflag [#allocation10], %s1700_s8  ;;  %s1496_s16 = sshra.s32 %s1836_s24, 4  ;;  %s1497_s16 = int_to_ptr.hbm [resolvable:$true] %s1496_s16 }
 0x155   : > { %s1498_s15 = scalar_lea.hbm %s1497_s16, 256  ;;  %s1502_s27 = scalar_lea.hbm %s1888_s5, 768 }
 0x156   : > { %p1499_p11 = scmp.ne.s32.totalorder %s1497_s16, %s1498_s15  ;;  %p1503_p3 = scmp.lt.s32.totalorder %s1497_s16, %s1888_s5 }
 0x157   : > { %p1504_p5 = scmp.lt.s32.totalorder %s1502_s27, %s1498_s15 }
 0x158   : > { %p1500_p12 = pnand %p1499_p11, %p1667_p0 }
 0x159   : > { %p1505_p1 = por %p1504_p5, %p1503_p3 }
 0x15a   : > { %p1501_p13 = pneg %p1500_p12 }
 0x15c   : > { %p1506_p4 = pnand %p1505_p1, %p1501_p13 }
 0x15e   : > { %1509 = shalt.err (!%p1506_p4)
}
 0x15f   : > { %s1564_s8 = smov 128   ;;  %s1565_s7 = smov 8  }
 0x160   : > { %1296 = dma.vmem_to_hbm [thread:$0]  (%p1667_p0), %s1834_s28, 4096, %s1836_s24, %s832_s10, %s1564_s8, %s1564_s8, %s1565_s7  }
 0x161 PF: > { %p1322_p8 = scmp.ge.s32.totalorder %s1556_s21, 2  ;;  %s878_s22 = sand.u32 1, %s1544_s18  }
 0x162   : > { %s879_s29 = scalar_lea.sflag [#allocation4], %s878_s22 }
 0x163   : > { %p1311_p2 = pnand %p1322_p8, %p1631_p6 }
 0x165   : > { %p1312_p7 = pneg %p1311_p2 }
 0x167   : > { %1535 = dma.done.wait (%p1312_p7), %s879_s29, 2048  }
 0x168   : > { %1537 = vsyncadd (%p1312_p7), %s879_s29, 4294965248  ;;  %s889_s26 = scalar_lea.sflag [#allocation10], %s878_s22 }
 0x169   : > { %1539 = dma.done.wait (%p1312_p7), %s889_s26, 4096  }
 0x16a   : > { %1541 = vsyncadd (%p1312_p7), %s889_s26, 4294963200  ;;  %p23_p0 = scmp.ge.s32.totalorder %s1657_s14, 5   ;;  %s1896_s18 = smov %s1548_s19 }
 0x16b   : > { %s1897_s19 = smov %s1552_s20  ;;  %s1898_s20 = smov %s1673_s23 }
 0x16c   : > { %s1899_s21 = smov %s1657_s14  ;;  %25 = sbr.rel (!%p23_p0) target bundleno = 8 (0x8), region = 106 }
 0x171   :  { %895 = vsyncpa [#allocation3], 1 }
 0x172   :  { %897 = vsyncpa [#allocation3 + $0x1], 1 }
 0x173   :  { %898 = vsyncpa [#allocation6], 1 }
 0x174   :  { %899 = vsyncpa [#allocation4], 1 }
 0x175   :  { %901 = vsyncpa [#allocation4 + $0x1], 1 }
 0x176   :  { %902 = vsyncpa [#allocation10], 1 }
 0x177   :  { %904 = vsyncpa [#allocation10 + $0x1], 1 }

</bundles_post_ra>
